<compile_context>
chip_gen: v7x
topology: tpu7x:2x2x1
jax: 0.10.0
libtpu: 0.0.40
codegen_flags: <defaults>
</compile_context>

<pallas_src>
import jax
import jax.numpy as jnp
from jax.experimental import pallas as pl
from jax.experimental.pallas import tpu as pltpu

_LANES = 128                    # lane-dense last dim (full vreg lane width)
_MAX_TM = 16384                 # max rows per tile -> 16384*128*4 B = 8 MiB f32
_MIN_PALLAS_ELEMS = 256 * 1024  # below ~1 MiB (f32) plain-jnp fusion wins
_VMEM_LIMIT = 48 << 20          # worst case: 2x8 MiB in + 2x8 MiB out = 32 MiB


def _cdiv(a, b):
    return -(-a // b)


def _round_up(a, b):
    return _cdiv(a, b) * b


def _boxcar_kernel(thresh_ref, x_ref, o_ref):
    # thresh_ref: (1,) float32 scalar living in SMEM.
    # Pure elementwise strict '>' compare -> 0.0 / 1.0 (VPU only, never the
    # bottleneck; the kernel is a streaming HBM copy with a compare in between).
    o_ref[...] = (x_ref[...] > thresh_ref[0]).astype(o_ref.dtype)


def _choose_tile_rows(rows):
    """Pick tile rows: sublane-aligned, <= _MAX_TM, and (for multi-tile cases)
    an even tile count so v7x's two TensorCores get balanced work."""
    if rows <= 16:
        return rows  # single tile; block == full array dims (no alignment req.)
    n_pairs = _cdiv(rows, 2 * _MAX_TM)
    return min(_MAX_TM, _round_up(_cdiv(rows, 2 * n_pairs), 16))


def heaviside_boxcar_call(x, thresh=1.0, subthresh=0.5, spiking=True,
                          min_pallas_elems=_MIN_PALLAS_ELEMS):
    """JAX/Pallas equivalent of HeavisideBoxcarCall.forward.

    x: float array, any shape (module is used with NCHW conv activations).
    Returns float32 array of same shape with (x > thresh) as 0.0/1.0.
    """
    if not spiking:
        # TODO(synk): original module calls primitive_function(x, thresh, subthresh)
        # which has a 2-arg signature (x, alpha); we implement the intended x * alpha
        # (alpha bound to thresh) as a trivial elementwise scale in plain JAX.
        return x * jnp.asarray(thresh, dtype=x.dtype)

    orig_shape = x.shape
    total = int(x.size)
    if total == 0:
        return jnp.zeros(orig_shape, jnp.float32)

    # Fast path: tiny activations (the SNN's typical 2x4x16x16 = 8 KiB) and
    # lane-unaligned ("ragged") sizes.  XLA's fused elementwise kernel is
    # already at the HBM roofline (one read + one write) and fuses into
    # neighbouring ops; going through the Pallas custom call would only add
    # launch overhead and/or extra full-array repack passes.
    if total < min_pallas_elems or (total % _LANES) != 0:
        return (x > jnp.asarray(thresh, dtype=x.dtype)).astype(jnp.float32)

    # --- lane-dense Pallas streaming path (zero-copy reshape, no padding) ----
    rows = total // _LANES
    tm = _choose_tile_rows(rows)
    grid = _cdiv(rows, tm)          # last tile may be partial; Pallas masks it

    x2d = x.reshape(rows, _LANES)                                   # bitcast
    thresh_arr = jnp.asarray(thresh, dtype=jnp.float32).reshape((1,))

    out2d = pl.pallas_call(
        _boxcar_kernel,
        out_shape=jax.ShapeDtypeStruct((rows, _LANES), jnp.float32),
        grid_spec=pl.GridSpec(
            grid=(grid,),
            in_specs=[
                pl.BlockSpec(memory_space=pltpu.MemorySpace.SMEM),   # thresh
                pl.BlockSpec((tm, _LANES), lambda i: (i, 0)),        # x tile
            ],
            out_specs=pl.BlockSpec((tm, _LANES), lambda i: (i, 0)),
        ),
        compiler_params=pltpu.CompilerParams(
            dimension_semantics=("parallel",),
            vmem_limit_bytes=_VMEM_LIMIT,
        ),
    )(thresh_arr, x2d)

    return out2d.reshape(orig_shape)                                # bitcast


if __name__ == "__main__":
    key = jax.random.PRNGKey(0)

    # Primary test: small NCHW activation tensor as the SNN module uses it.
    # Force the Pallas path (min_pallas_elems=0) so the kernel itself runs.
    x = jax.random.normal(key, (2, 4, 16, 16), dtype=jnp.float32) * 2.0
    out = heaviside_boxcar_call(x, thresh=1.0, subthresh=0.5, spiking=True,
                                min_pallas_elems=0)
    out = jax.block_until_ready(out)
    ref = (x > 1.0).astype(jnp.float32)
    assert out.shape == x.shape and out.dtype == jnp.float32
    assert bool(jnp.all(out == ref))

    # Same input through the default auto path (small -> fused plain-jnp).
    out_auto = jax.block_until_ready(heaviside_boxcar_call(x, thresh=1.0))
    assert bool(jnp.all(out_auto == ref))

    # Larger activation exercising the multi-tile (even-grid) Pallas path.
    k1, k2 = jax.random.split(key)
    x_big = jax.random.normal(k1, (4, 16, 128, 128), dtype=jnp.float32)
    out_big = jax.block_until_ready(heaviside_boxcar_call(x_big, thresh=1.0))
    assert out_big.dtype == jnp.float32
    assert bool(jnp.all(out_big == (x_big > 1.0).astype(jnp.float32)))

    # Ragged (lane-unaligned) shape -> no padding round-trips, fused jnp path.
    x_odd = jax.random.normal(k2, (3, 5, 37, 41), dtype=jnp.float32)
    out_odd = jax.block_until_ready(heaviside_boxcar_call(x_odd, thresh=0.25))
    assert bool(jnp.all(out_odd == (x_odd > 0.25).astype(jnp.float32)))

    print("KERNEL_OK")
</pallas_src>

<mosaic_0001>
module attributes {stable_mosaic.version = 11 : i64} {
  func.func @_boxcar_kernel(%arg0: i32, %arg1: memref<1xf32, #tpu.memory_space<smem>>, %arg2: memref<16x128xf32, #tpu.memory_space<vmem>>, %arg3: memref<16x128xf32, #tpu.memory_space<vmem>>) attributes {dimension_semantics = [#tpu.dimension_semantics<parallel>], iteration_bounds = array<i64: 1>, scalar_prefetch = 0 : i64, scratch_operands = 0 : i64, tpu.core_type = #tpu.core_type<tc>, window_params = [{transform_indices = @transform_0, window_bounds = array<i64: 1>}, {transform_indices = @transform_1, window_bounds = array<i64: 16, 128>}, {transform_indices = @transform_2, window_bounds = array<i64: 16, 128>}]} {
    %c0 = arith.constant 0 : index
    %c0_0 = arith.constant 0 : index
    %0 = vector.load %arg2[%c0, %c0_0] : memref<16x128xf32, #tpu.memory_space<vmem>>, vector<16x128xf32>
    %c0_1 = arith.constant 0 : index
    %1 = memref.load %arg1[%c0_1] : memref<1xf32, #tpu.memory_space<smem>>
    %2 = vector.broadcast %1 : f32 to vector<16x128xf32>
    %3 = arith.cmpf ogt, %0, %2 : vector<16x128xf32>
    %4 = arith.extui %3 : vector<16x128xi1> to vector<16x128xi32>
    %5 = arith.sitofp %4 : vector<16x128xi32> to vector<16x128xf32>
    %c0_2 = arith.constant 0 : index
    %c0_3 = arith.constant 0 : index
    %6 = vector.load %arg3[%c0_2, %c0_3] : memref<16x128xf32, #tpu.memory_space<vmem>>, vector<16x128xf32>
    tpu.vector_store %arg3[%c0_2, %c0_3], %5 {strides = array<i32>} : memref<16x128xf32, #tpu.memory_space<vmem>>, vector<16x128xf32>,
    return
  }
  func.func @transform_0(%arg0: i32) -> i32 {
    %c0_i32 = arith.constant 0 : i32
    %c0_i32_0 = arith.constant 0 : i32
    return %c0_i32 : i32
  }
  func.func @transform_1(%arg0: i32) -> (i32, i32) {
    %c0_i32 = arith.constant 0 : i32
    %c0_i32_0 = arith.constant 0 : i32
    return %arg0, %c0_i32 : i32, i32
  }
  func.func @transform_2(%arg0: i32) -> (i32, i32) {
    %c0_i32 = arith.constant 0 : i32
    %c0_i32_0 = arith.constant 0 : i32
    return %arg0, %c0_i32 : i32, i32
  }
}

</mosaic_0001>

<bundles_post_ra>
// kernel: tpu_custom_call.1
= control target key start
LH: loop header
LB: loop body
LE: loop exit
PB: predicated region body
PF: predicated region fallthrough
CT: control target
= control target key end

     0   :  { %8 = vsyncpa [#allocation4], 0  ;;  %s164_s0 = inlined_call_operand.<no memory space> [shape: f32[1], index: 0, kind: input, shape index: {}]   ;;  %s165_s1 = inlined_call_operand.hbm [shape: f32[16,128], index: 1, kind: input, shape index: {}]   ;;  %s166_s2 = inlined_call_operand.hbm [shape: f32[16,128], index: 2, kind: output, shape index: {}]  }
   0x1   :  { %9 = vsyncpa [#allocation5], 0  ;;  %s111_s9 = smov [#allocation3]   ;;  %s63_s13 = scalar_lea.hbm %s165_s1, 256 }
   0x2   :  { %s17_s10 = sshll.u32 %s111_s9, 4  ;;  %p64_p0 = scmp.ne.s32.totalorder %s165_s1, %s63_s13  ;;  %s18_s10 = int_to_ptr.vmem [resolvable:$true] %s17_s10 }
   0x3   :  { %p67_p1 = scmp.lt.u32.totalorder %s63_s13, %s165_s1 }
   0x5   :  { %p69_p2 = pnand %p67_p1, %p64_p0 }
   0x7   :  { %72 = shalt.err (!%p69_p2)
}
   0x8   :  { %s73_s18 = scalar_lea.vmem %s18_s10, 256  ;;  %p78_p4 = scmp.lt.s32.totalorder %s18_s10, %s18_s10 }
   0x9   :  { %p74_p3 = scmp.ne.s32.totalorder %s18_s10, %s73_s18  ;;  %p79_p5 = scmp.lt.s32.totalorder %s73_s18, %s73_s18 }
   0xb   :  { %p80_p6 = por %p79_p5, %p78_p4 }
   0xd   :  { %p81_p7 = pnand %p80_p6, %p74_p3 }
   0xf   :  { %84 = shalt.err (!%p81_p7)
}
  0x10   :  { %s112_s19 = smov 128   ;;  %s113_s20 = smov 8  }
  0x11   :  { %23 = dma.hbm_to_vmem [thread:$0]  %s165_s1, 256, %s18_s10, [#allocation4], %s112_s19, %s112_s19, %s113_s20  }
  0x12   :  { %107 = dma.done.wait [#allocation4], 256  }
  0x13   :  { %108 = vsyncadd [#allocation4], 4294967040  ;;  %v30_v0 = vstv %s164_s0  ;;  %s114_s25 = smov [#allocation6]   ;;  %v27_v1 = vld [vmem:[#allocation3] sm:$0xff]  ;;  %v28_v2 = vld [vmem:[#allocation3 + $0x8] sm:$0xff]  ;;  %v115_v3 = vmov 0.0  }
  0x14   :  { %s44_s26 = sshll.u32 %s114_s25, 4  ;;  %vm31_vm0 = vcmp.gt.f32.partialorder %v27_v1, %v30_v0  ;;  %vm32_vm1 = vcmp.gt.f32.partialorder %v28_v2, %v30_v0  ;;  %s45_s26 = int_to_ptr.vmem [resolvable:$true] %s44_s26 }
  0x15   :  { %v56_v4 = vsel %vm31_vm0, 1.0, %v115_v3  ;;  %v57_v5 = vsel %vm32_vm1, 1.0, %v115_v3  ;;  %s85_s27 = scalar_lea.vmem %s45_s26, 256  ;;  %p90_p9 = scmp.lt.s32.totalorder %s45_s26, %s45_s26 }
  0x16   :  { %37 = vst [vmem:[#allocation6] sm:$0xff] %v56_v4  ;;  %38 = vst [vmem:[#allocation6 + $0x8] sm:$0xff] %v57_v5  ;;  %p86_p8 = scmp.ne.s32.totalorder %s45_s26, %s85_s27  ;;  %p91_p10 = scmp.lt.s32.totalorder %s85_s27, %s85_s27 }
  0x18   :  { %p92_p11 = por %p91_p10, %p90_p9 }
  0x1a   :  { %p93_p12 = pnand %p92_p11, %p86_p8 }
  0x1c   :  { %96 = shalt.err (!%p93_p12)
}
  0x1d   :  { %s97_s28 = scalar_lea.hbm %s166_s2, 256 }
  0x1e   :  { %p98_p13 = scmp.ne.s32.totalorder %s166_s2, %s97_s28  ;;  %p101_p0 = scmp.lt.u32.totalorder %s97_s28, %s166_s2 }
  0x20   :  { %p103_p1 = pnand %p101_p0, %p98_p13 }
  0x22   :  { %106 = shalt.err (!%p103_p1)
}
  0x23   :  { %50 = dma.vmem_to_hbm [thread:$0]  %s45_s26, 256, %s166_s2, [#allocation5], %s112_s19, %s112_s19, %s113_s20  }
  0x24   :  { %109 = dma.done.wait [#allocation5], 256  }
  0x25   :  { %110 = vsyncadd [#allocation5], 4294967040 }
  0x26   :  { %54 = vsyncpa [#allocation4], 1 }
  0x27   :  { %55 = vsyncpa [#allocation5], 1 }

</bundles_post_ra>
